<compile_context>
chip_gen: v5e
topology: v5e:2x2
jax: 0.10.0
libtpu: 0.0.40
codegen_flags: <defaults>
</compile_context>

<pallas_src>
import jax
import jax.numpy as jnp
from jax.experimental import pallas as pl
from jax.experimental.pallas import tpu as pltpu

_LANES = 128
# 2 MiB blocks: 2 arrays (in+out) x 2 pipeline buffers x 2 MiB = 8 MiB,
# well under the default scoped-VMEM limit on every generation
# (v5e 16 MiB, v6e 32 MiB, v7x 32 MiB).
_MAX_BLOCK_BYTES = 2 * 1024 * 1024
# Aim for at least this many grid steps so v7x can shard the copy across its
# two TensorCores (review item). Per-step overhead (~0.35 us) is negligible
# next to the HBM round trip for any tensor big enough to matter.
_MIN_GRID_STEPS = 4


# ---------------------------------------------------------------------------
# Copy path A (default): single HBM->HBM DMA, no VMEM staging.
# ---------------------------------------------------------------------------
def _dma_copy_kernel(x_hbm, o_hbm, sem):
    cp = pltpu.make_async_copy(x_hbm, o_hbm, sem)
    cp.start()
    cp.wait()


def _identity_copy_dma(x):
    """Materialize a fresh copy of x via one HBM->HBM async DMA."""
    if x.size == 0:
        # Nothing to copy; an alias of an empty array is indistinguishable.
        return x
    return pl.pallas_call(
        _dma_copy_kernel,
        out_shape=jax.ShapeDtypeStruct(x.shape, x.dtype),
        in_specs=[pl.BlockSpec(memory_space=pl.ANY)],
        out_specs=pl.BlockSpec(memory_space=pl.ANY),
        scratch_shapes=[pltpu.SemaphoreType.DMA(())],
        compiler_params=pltpu.CompilerParams(has_side_effects=True),
        cost_estimate=pl.CostEstimate(
            flops=0, transcendentals=0, bytes_accessed=2 * x.nbytes),
    )(x)


# ---------------------------------------------------------------------------
# Copy path B (optional): lane-dense VMEM-staged blocked copy.
# ---------------------------------------------------------------------------
def _vmem_copy_kernel(x_ref, o_ref):
    # Pure passthrough of one lane-dense VMEM tile; no VALU filler -- the
    # binding resource is the HBM/DMA path.
    o_ref[...] = x_ref[...]


def _sublane_multiple(dtype):
    # Second-to-last-dim packing multiple: f32 -> 8, bf16/f16 -> 16,
    # int8/fp8 -> 32.
    itemsize = jnp.dtype(dtype).itemsize
    return max(8, 8 * (4 // max(1, itemsize)))


def _identity_copy_vmem(x):
    """Materialize a copy of x via a lane-dense (rows, 128) blocked copy."""
    total = x.size
    if total == 0:
        return x
    if total % _LANES != 0:
        # Non-lane-divisible element counts: use the HBM->HBM DMA path, which
        # handles arbitrary shapes and still returns a fresh buffer (fixes the
        # previous silent "return x" fallback).
        return _identity_copy_dma(x)

    rows = total // _LANES
    flat = x.reshape(rows, _LANES)
    itemsize = flat.dtype.itemsize
    sub = _sublane_multiple(flat.dtype)
    bytes_per_row = _LANES * itemsize

    # Largest block that respects the VMEM budget, rounded to the sublane
    # multiple for this dtype (keeps stores unmasked full-width vst).
    max_rows_by_vmem = max(sub, ((_MAX_BLOCK_BYTES // bytes_per_row) // sub) * sub)
    # Cap so we get >= _MIN_GRID_STEPS grid steps when rows allow (v7x: lets
    # both TensorCores drive their share of HBM bandwidth).
    target_rows = max(sub, (pl.cdiv(rows, _MIN_GRID_STEPS) // sub) * sub)
    block_rows = min(max_rows_by_vmem, target_rows)
    if block_rows >= rows:
        block_rows = rows  # full extent: (8,128) rule trivially satisfied

    grid = (pl.cdiv(rows, block_rows),)
    block_bytes = block_rows * bytes_per_row
    # Explicit scoped-VMEM budget: in+out, double-buffered, plus headroom for
    # internal scratch. Well under physical VMEM on v5e/v6e/v7x.
    vmem_limit = 4 * block_bytes + (8 << 20)

    out = pl.pallas_call(
        _vmem_copy_kernel,
        out_shape=jax.ShapeDtypeStruct((rows, _LANES), flat.dtype),
        grid=grid,
        in_specs=[pl.BlockSpec((block_rows, _LANES), lambda i: (i, 0))],
        out_specs=pl.BlockSpec((block_rows, _LANES), lambda i: (i, 0)),
        compiler_params=pltpu.CompilerParams(
            # TODO(synk): pltpu.CORE_PARALLEL is the knob that actually changes
            # core assignment on v7x; "parallel" is the portable/safe choice.
            dimension_semantics=("parallel",),
            vmem_limit_bytes=vmem_limit,
        ),
        cost_estimate=pl.CostEstimate(
            flops=0, transcendentals=0, bytes_accessed=2 * flat.nbytes),
    )(flat)
    return out.reshape(x.shape)


# ---------------------------------------------------------------------------
# Module-equivalent API
# ---------------------------------------------------------------------------
def identity_first_stage_forward(x, *args, use_pallas_copy=False,
                                 copy_method="dma", **kwargs):
    """IdentityFirstStage.forward (== encode == decode): returns x unchanged.

    Default path is the zero-cost identity (return x -- no kernel launch, no
    HBM round trip). Set use_pallas_copy=True to get a freshly materialized
    buffer: copy_method="dma" (default) does a single HBM->HBM async DMA;
    copy_method="vmem" routes through the lane-dense blocked VMEM copy.
    """
    if not use_pallas_copy:
        return x
    if copy_method == "vmem":
        return _identity_copy_vmem(x)
    return _identity_copy_dma(x)


identity_encode = identity_first_stage_forward
identity_decode = identity_first_stage_forward


def identity_quantize(x, vq_interface=False, **kwargs):
    """Mirror of IdentityFirstStage.quantize semantics."""
    y = identity_first_stage_forward(x)
    if vq_interface:
        return (y, None, [None, None, None])
    return y


if __name__ == "__main__":
    # IdentityFirstStage has no parameters, so only an input is needed.
    key = jax.random.PRNGKey(0)
    x = jax.random.normal(key, (2, 4, 16, 16), dtype=jnp.float32)

    # Fast (zero-cost) identity path -- the recommended production path.
    y_fast = identity_first_stage_forward(x)
    assert y_fast.shape == x.shape and y_fast.dtype == x.dtype
    assert bool(jnp.array_equal(y_fast, x))

    # HBM->HBM DMA copy path (fresh buffer, no VMEM staging).
    y_dma = identity_first_stage_forward(x, use_pallas_copy=True,
                                         copy_method="dma")
    y_dma = jax.block_until_ready(y_dma)
    assert y_dma.shape == x.shape and y_dma.dtype == x.dtype
    assert bool(jnp.array_equal(y_dma, x))

    # Lane-dense VMEM-staged copy path (2048 elements -> (16,128), two
    # (8,128) blocks so the grid has >1 step).
    y_vmem = identity_first_stage_forward(x, use_pallas_copy=True,
                                          copy_method="vmem")
    y_vmem = jax.block_until_ready(y_vmem)
    assert y_vmem.shape == x.shape and y_vmem.dtype == x.dtype
    assert bool(jnp.array_equal(y_vmem, x))

    # Non-128-divisible element count now still returns a real copy (falls
    # through to the DMA path instead of silently aliasing x).
    x_odd = jax.random.normal(jax.random.PRNGKey(1), (3, 5, 7),
                              dtype=jnp.float32)
    y_odd = identity_first_stage_forward(x_odd, use_pallas_copy=True,
                                         copy_method="vmem")
    y_odd = jax.block_until_ready(y_odd)
    assert bool(jnp.array_equal(y_odd, x_odd))

    # quantize with vq_interface=True (Python-level glue, no tensor compute).
    q, none_a, none_list = identity_quantize(x, vq_interface=True)
    q = jax.block_until_ready(q)
    assert bool(jnp.array_equal(q, x))
    assert none_a is None and none_list == [None, None, None]

    print("KERNEL_OK")
</pallas_src>

<mosaic_0001>
module attributes {stable_mosaic.version = 11 : i64} {
  func.func @_dma_copy_kernel(%arg0: memref<2x4x16x16xf32, #tpu.memory_space<any>>, %arg1: memref<2x4x16x16xf32, #tpu.memory_space<any>>, %arg2: memref<!tpu.dma_semaphore, #tpu.memory_space<semaphore_mem>>) attributes {dimension_semantics = [], scalar_prefetch = 0 : i64, scratch_operands = 1 : i64, tpu.core_type = #tpu.core_type<tc>} {
    tpu.enqueue_dma source(%arg0 : memref<2x4x16x16xf32, #tpu.memory_space<any>>) target(%arg1 : memref<2x4x16x16xf32, #tpu.memory_space<any>>) target_semaphore(%arg2 : memref<!tpu.dma_semaphore, #tpu.memory_space<semaphore_mem>>)
    tpu.wait_dma2 semaphore(%arg2 : memref<!tpu.dma_semaphore, #tpu.memory_space<semaphore_mem>>) src(%arg0 : memref<2x4x16x16xf32, #tpu.memory_space<any>>) dst(%arg1 : memref<2x4x16x16xf32, #tpu.memory_space<any>>)
    return
  }
}

</mosaic_0001>

<bundles_post_ra>
// kernel: tpu_custom_call.1
= control target key start
LH: loop header
LB: loop body
LE: loop exit
PB: predicated region body
PF: predicated region fallthrough
CT: control target
= control target key end

     0   :  { %s34_s12 = smov [#allocation2]   ;;  %s35_s13 = smov [#allocation3]   ;;  %s53_s0 = inlined_call_operand.hbm [shape: f32[2,4,16,16], index: 0, kind: input, shape index: {}]   ;;  %s54_s1 = inlined_call_operand.hbm [shape: f32[2,4,16,16], index: 1, kind: output, shape index: {}]  }
   0x1   :  { %s10_s8 = sshll.u32 %s53_s0, 4  ;;  %s12_s11 = sshll.u32 %s54_s1, 4  ;;  %s11_s8 = int_to_ptr.hbm [resolvable:$true] %s10_s8  ;;  %s13_s11 = int_to_ptr.hbm [resolvable:$true] %s12_s11 }
   0x2   :  { %s36_s14 = smov 0  }
   0x3   :  { %16 = dma.general %s11_s8, 2048, %s13_s11, %s34_s12, %s35_s13, [#allocation4], %s36_s14, 0  }
   0x4   :  { %32 = dma.done.wait [#allocation2], 2048 }
   0x5   :  { %33 = vsyncadd [#allocation2], 4294965248 }
   0x6   :  { %22 = vsyncmov [#allocation2] }
   0x9   :  { %s23_s15 = vpop.sfrf %22 }
   0xa   :  { %p28_p0 = scmp.ne.s32.totalorder %s23_s15, 0 }
   0xc   :  { %27 = shalt.err (%p28_p0)  }

</bundles_post_ra>
